<compile_context>
chip_gen: v5e
topology: v5e:2x2
jax: 0.10.0
libtpu: 0.0.40
codegen_flags: <defaults>
</compile_context>

<pallas_src>
import functools

import jax
import jax.numpy as jnp
from jax.experimental import pallas as pl
from jax.experimental.pallas import tpu as pltpu

_LANES = 1024       # lane-dense slab width (multiple of 128)
_TILE_ROWS = 512    # (512, 1024) f32 block = 2 MiB -> ~85% of HBM roofline


def _round_up(x, m):
    return (x + m - 1) // m * m


def _activation_kernel(x_ref, o_ref, *, vmf_kappa, threshold, compnet_type):
    x = x_ref[...]
    if compnet_type == "vmf":
        # exp on the EUP (free slot at HBM-bound rates); select on the VPU.
        o_ref[...] = jnp.where(x > threshold,
                               jnp.exp(vmf_kappa * x),
                               jnp.zeros_like(x))
    elif compnet_type == "bernoulli":
        o_ref[...] = (x > threshold).astype(x.dtype)
    else:
        # identity passthrough (matches PyTorch: unknown type returns x unchanged)
        o_ref[...] = x


def activation_layer(x, vmf_kappa, compnet_type="vmf", threshold=0.0):
    """Pallas equivalent of ActivationLayer.forward.

    x: jnp array of any shape (NCHW expected for conv-style inputs).
    vmf_kappa, threshold: python floats (hyperparameters, baked into the kernel).
    Keeps the input dtype (run in bf16 upstream to halve HBM traffic on v6e/v7x).
    """
    orig_shape = x.shape
    total = 1
    for d in orig_shape:
        total *= d
    if total == 0:
        return x

    # Lane-dense slab: (rows, 1024), rows a multiple of tile_rows.
    rows_min = pl.cdiv(total, _LANES)
    tile_rows = _TILE_ROWS if rows_min >= _TILE_ROWS else _round_up(rows_min, 8)
    rows = _round_up(rows_min, tile_rows)
    padded_total = rows * _LANES

    x_flat = x.reshape(-1)
    pad = padded_total - total
    if pad:
        x_flat = jnp.pad(x_flat, (0, pad))
    x2d = x_flat.reshape(rows, _LANES)

    grid = (rows // tile_rows,)

    kernel = functools.partial(
        _activation_kernel,
        vmf_kappa=float(vmf_kappa),
        threshold=float(threshold),
        compnet_type=compnet_type,
    )

    itemsize = jnp.dtype(x.dtype).itemsize
    cost = pl.CostEstimate(
        flops=2 * total,
        transcendentals=total if compnet_type == "vmf" else 0,
        bytes_accessed=2 * total * itemsize,
    )

    out2d = pl.pallas_call(
        kernel,
        out_shape=jax.ShapeDtypeStruct((rows, _LANES), x.dtype),
        grid=grid,
        in_specs=[pl.BlockSpec((tile_rows, _LANES), lambda i: (i, 0))],
        out_specs=pl.BlockSpec((tile_rows, _LANES), lambda i: (i, 0)),
        compiler_params=pltpu.CompilerParams(
            dimension_semantics=("parallel",),
        ),
        cost_estimate=cost,
    )(x2d)

    out_flat = out2d.reshape(-1)
    if pad:
        out_flat = out_flat[:total]
    return out_flat.reshape(orig_shape)


def _reference(x, vmf_kappa, compnet_type="vmf", threshold=0.0):
    if compnet_type == "vmf":
        return jnp.exp(vmf_kappa * x) * (x > threshold).astype(x.dtype)
    elif compnet_type == "bernoulli":
        return (x > threshold).astype(x.dtype)
    return x


if __name__ == "__main__":
    key = jax.random.PRNGKey(0)
    # Small NCHW input consistent with a conv feature map.
    x = jax.random.normal(key, (2, 4, 16, 16), dtype=jnp.float32)

    vmf_kappa = 30.0
    threshold = 0.0

    # vmf branch
    out_vmf = activation_layer(x, vmf_kappa, compnet_type="vmf", threshold=threshold)
    out_vmf = jax.block_until_ready(out_vmf)
    ref_vmf = _reference(x, vmf_kappa, "vmf", threshold)
    assert out_vmf.shape == x.shape and out_vmf.dtype == x.dtype
    assert jnp.allclose(out_vmf, ref_vmf, rtol=1e-5, atol=1e-5)

    # bernoulli branch
    out_bern = activation_layer(x, vmf_kappa, compnet_type="bernoulli", threshold=threshold)
    out_bern = jax.block_until_ready(out_bern)
    ref_bern = _reference(x, vmf_kappa, "bernoulli", threshold)
    assert jnp.allclose(out_bern, ref_bern)

    # identity passthrough branch
    out_id = activation_layer(x, vmf_kappa, compnet_type="other", threshold=threshold)
    out_id = jax.block_until_ready(out_id)
    assert jnp.allclose(out_id, x)

    print("KERNEL_OK")
</pallas_src>

<mosaic_0001>
module attributes {stable_mosaic.version = 11 : i64} {
  func.func @_activation_kernel(%arg0: i32, %arg1: memref<8x1024xf32, #tpu.memory_space<vmem>>, %arg2: memref<8x1024xf32, #tpu.memory_space<vmem>>) attributes {dimension_semantics = [#tpu.dimension_semantics<parallel>], iteration_bounds = array<i64: 1>, scalar_prefetch = 0 : i64, scratch_operands = 0 : i64, tpu.core_type = #tpu.core_type<tc>, window_params = [{transform_indices = @transform_0, window_bounds = array<i64: 8, 1024>}, {transform_indices = @transform_1, window_bounds = array<i64: 8, 1024>}]} {
    %c0 = arith.constant 0 : index
    %c0_0 = arith.constant 0 : index
    %0 = vector.load %arg1[%c0, %c0_0] : memref<8x1024xf32, #tpu.memory_space<vmem>>, vector<8x1024xf32>
    %cst = arith.constant 0.000000e+00 : f32
    %1 = vector.broadcast %cst : f32 to vector<8x1024xf32>
    %2 = arith.cmpf ogt, %0, %1 : vector<8x1024xf32>
    %cst_1 = arith.constant 3.000000e+01 : f32
    %3 = vector.broadcast %cst_1 : f32 to vector<8x1024xf32>
    %4 = arith.mulf %3, %0 : vector<8x1024xf32>
    %5 = math.exp %4 : vector<8x1024xf32>
    %cst_2 = arith.constant 0.000000e+00 : f32
    %6 = vector.broadcast %cst_2 : f32 to vector<8x1024xf32>
    %7 = arith.select %2, %5, %6 : vector<8x1024xi1>, vector<8x1024xf32>
    %c0_3 = arith.constant 0 : index
    %c0_4 = arith.constant 0 : index
    %8 = vector.load %arg2[%c0_3, %c0_4] : memref<8x1024xf32, #tpu.memory_space<vmem>>, vector<8x1024xf32>
    tpu.vector_store %arg2[%c0_3, %c0_4], %7 {strides = array<i32>} : memref<8x1024xf32, #tpu.memory_space<vmem>>, vector<8x1024xf32>,
    return
  }
  func.func @transform_0(%arg0: i32) -> (i32, i32) {
    %c0_i32 = arith.constant 0 : i32
    %c0_i32_0 = arith.constant 0 : i32
    return %arg0, %c0_i32 : i32, i32
  }
  func.func @transform_1(%arg0: i32) -> (i32, i32) {
    %c0_i32 = arith.constant 0 : i32
    %c0_i32_0 = arith.constant 0 : i32
    return %arg0, %c0_i32 : i32, i32
  }
}

</mosaic_0001>

<bundles_post_ra>
// kernel: tpu_custom_call.1
= control target key start
LH: loop header
LB: loop body
LE: loop exit
PB: predicated region body
PF: predicated region fallthrough
CT: control target
= control target key end

     0   :  { %6 = vsyncpa [#allocation3], 0  ;;  %s184_s0 = inlined_call_operand.hbm [shape: f32[8,1024], index: 0, kind: input, shape index: {}]   ;;  %s185_s1 = inlined_call_operand.hbm [shape: f32[8,1024], index: 1, kind: output, shape index: {}]  }
   0x1   :  { %7 = vsyncpa [#allocation4], 0  ;;  %s13_s8 = sshll.u32 %s184_s0, 4  ;;  %s166_s9 = smov [#allocation2]   ;;  %s14_s8 = int_to_ptr.hbm [resolvable:$true] %s13_s8 }
   0x2   :  { %s15_s10 = sshll.u32 %s166_s9, 4  ;;  %s16_s10 = int_to_ptr.vmem [resolvable:$true] %s15_s10 }
   0x3   :  { %18 = dma.hbm_to_vmem [thread:$0]  %s14_s8, 1024, %s16_s10, [#allocation3]  }
   0x4   :  { %162 = dma.done.wait [#allocation3], 1024  }
   0x5   :  { %163 = vsyncadd [#allocation3], 4294966272  ;;  %v23_v0 = vld [vmem:[#allocation2] sm:$0xff]  ;;  %v24_v1 = vld [vmem:[#allocation2 + $0x8] sm:$0xff]  ;;  %s167_s0 = smov [#allocation5]   ;;  %s86_s14 = sshll.u32 %s185_s1, 4  ;;  %s87_s14 = int_to_ptr.hbm [resolvable:$true] %s86_s14 }
   0x6   :  { %v25_v2 = vld [vmem:[#allocation2 + $0x10] sm:$0xff]  ;;  %v39_v3 = vmul.f32 30.0, %v23_v0  ;;  %v40_v4 = vmul.f32 30.0, %v24_v1  ;;  %v26_v5 = vld [vmem:[#allocation2 + $0x18] sm:$0xff]  ;;  %v27_v6 = vld [vmem:[#allocation2 + $0x20] sm:$0xff]  ;;  %vm31_vm0 = vcmp.gt.f32.partialorder %v23_v0, 0.0 }
   0x7   :  { %v41_v7 = vmul.f32 30.0, %v25_v2  ;;  %v42_v8 = vmul.f32 30.0, %v26_v5  ;;  %v28_v9 = vld [vmem:[#allocation2 + $0x28] sm:$0xff]  ;;  %v29_v10 = vld [vmem:[#allocation2 + $0x30] sm:$0xff]  ;;  %v43_v13 = vmul.f32 30.0, %v27_v6  ;;  %v30_v19 = vld [vmem:[#allocation2 + $0x38] sm:$0xff] }
   0x8   :  { %v47_v11 = vmul.f32 1.442695, %v39_v3  ;;  %v49_v12 = vmul.f32 1.442695, %v40_v4  ;;  %v44_v16 = vmul.f32 30.0, %v28_v9  ;;  %v45_v18 = vmul.f32 30.0, %v29_v10 }
   0x9   :  { %v51_v14 = vmul.f32 1.442695, %v41_v7  ;;  %v53_v15 = vmul.f32 1.442695, %v42_v8  ;;  %v55_v17 = vmul.f32 1.442695, %v43_v13 }
   0xa   :  { %98 = vpow2.f32 %v47_v11  ;;  %v57_v20 = vmul.f32 1.442695, %v44_v16  ;;  %v46_v21 = vmul.f32 30.0, %v30_v19  ;;  %v59_v22 = vmul.f32 1.442695, %v45_v18  ;;  %s84_s11 = sshll.u32 %s167_s0, 4  ;;  %s85_s11 = int_to_ptr.vmem [resolvable:$true] %s84_s11 }
   0xb   :  { %100 = vpow2.f32 %v49_v12  ;;  %vm32_vm1 = vcmp.gt.f32.partialorder %v24_v1, 0.0  ;;  %vm33_vm2 = vcmp.gt.f32.partialorder %v25_v2, 0.0  ;;  %vm34_vm3 = vcmp.gt.f32.partialorder %v26_v5, 0.0 }
   0xc   :  { %102 = vpow2.f32 %v51_v14  ;;  %v61_v23 = vmul.f32 1.442695, %v46_v21  ;;  %vm35_vm4 = vcmp.gt.f32.partialorder %v27_v6, 0.0  ;;  %vm36_vm5 = vcmp.gt.f32.partialorder %v28_v9, 0.0 }
   0xd   :  { %104 = vpow2.f32 %v53_v15  ;;  %vm37_vm6 = vcmp.gt.f32.partialorder %v29_v10, 0.0  ;;  %vm38_vm7 = vcmp.gt.f32.partialorder %v30_v19, 0.0 }
   0xe   :  { %106 = vpow2.f32 %v55_v17 }
   0xf   :  { %108 = vpow2.f32 %v57_v20 }
  0x10   :  { %v99_v24 = vpop.eup %98  ;;  %110 = vpow2.f32 %v59_v22 }
  0x11   :  { %v101_v25 = vpop.eup %100  ;;  %v63_v26 = vsel %vm31_vm0, %v99_v24, 0.0  ;;  %112 = vpow2.f32 %v61_v23 }
  0x12   :  { %v103_v27 = vpop.eup %102  ;;  %71 = vst [vmem:[#allocation5] sm:$0xff] %v63_v26  ;;  %v64_v28 = vsel %vm32_vm1, %v101_v25, 0.0 }
  0x13   :  { %v105_v29 = vpop.eup %104  ;;  %72 = vst [vmem:[#allocation5 + $0x8] sm:$0xff] %v64_v28  ;;  %v65_v30 = vsel %vm33_vm2, %v103_v27, 0.0 }
  0x14   :  { %v107_v31 = vpop.eup %106  ;;  %73 = vst [vmem:[#allocation5 + $0x10] sm:$0xff] %v65_v30  ;;  %v66_v32 = vsel %vm34_vm3, %v105_v29, 0.0 }
  0x15   :  { %v109_v33 = vpop.eup %108  ;;  %74 = vst [vmem:[#allocation5 + $0x18] sm:$0xff] %v66_v32  ;;  %v67_v34 = vsel %vm35_vm4, %v107_v31, 0.0 }
  0x16   :  { %v111_v35 = vpop.eup %110  ;;  %75 = vst [vmem:[#allocation5 + $0x20] sm:$0xff] %v67_v34  ;;  %v68_v36 = vsel %vm36_vm5, %v109_v33, 0.0 }
  0x17   :  { %v113_v37 = vpop.eup %112  ;;  %76 = vst [vmem:[#allocation5 + $0x28] sm:$0xff] %v68_v36  ;;  %v69_v38 = vsel %vm37_vm6, %v111_v35, 0.0 }
  0x18   :  { %77 = vst [vmem:[#allocation5 + $0x30] sm:$0xff] %v69_v38  ;;  %v70_v39 = vsel %vm38_vm7, %v113_v37, 0.0 }
  0x19   :  { %78 = vst [vmem:[#allocation5 + $0x38] sm:$0xff] %v70_v39 }
  0x1a   :  { %89 = dma.vmem_to_hbm [thread:$0]  %s85_s11, 1024, %s87_s14, [#allocation4]  }
  0x1b   :  { %164 = dma.done.wait [#allocation4], 1024  }
  0x1c   :  { %165 = vsyncadd [#allocation4], 4294966272 }
  0x1d   :  { %94 = vsyncpa [#allocation3], 1 }
  0x1e   :  { %95 = vsyncpa [#allocation4], 1 }

</bundles_post_ra>
